<compile_context>
chip_gen: v7x
topology: tpu7x:2x2x1
jax: 0.10.0
libtpu: 0.0.40
codegen_flags: <defaults>
</compile_context>

<pallas_src>
import functools
import numpy as np
import jax
import jax.numpy as jnp
from jax.experimental import pallas as pl
from jax.experimental.pallas import tpu as pltpu


def _mha_kernel(v_ref, w_ref, b_ref, expand_ref, out_ref, attn_ref, *, mxu_dtype):
    """Fused multi-head attention for one batch block.

    v_ref     : (Bt, S, d_in)  input sequence block (DMA'd once)
    w_ref     : (d_in, H)      fused score weights  w_eff[:,h] = Wk_h^T Q_h / temp
    b_ref     : (1, H)         fused score bias     b_eff[h]   = bk_h . Q_h / temp
    expand_ref: (H, d_in)      0/1 block-diagonal head->lanes expansion (hoisted)
    out_ref   : (Bt, d_in)     per-head outputs, head-major along lanes (lane-dense)
    attn_ref  : (H, Bt, S)     attention weights, already in the final layout
    """
    bt, s, d_in = v_ref.shape
    n_head = w_ref.shape[1]

    v3 = v_ref[...].astype(jnp.float32)               # (Bt, S, d_in)
    v2 = v3.reshape(bt * s, d_in)                      # lane dim unchanged -> free

    # --- scores: K-projection already folded into w_eff -> one MXU matmul.
    scores = jnp.dot(v2.astype(mxu_dtype), w_ref[...].astype(mxu_dtype),
                     preferred_element_type=jnp.float32) + b_ref[...]   # (Bt*S, H)
    scores = scores.reshape(bt, s, n_head)             # (Bt, S, H)

    # --- softmax over the sequence axis (axis=1), fully vectorized.
    m = jnp.max(scores, axis=1, keepdims=True)         # (Bt, 1, H)
    e = jnp.exp(scores - m)                            # (Bt, S, H)
    denom = jnp.sum(e, axis=1, keepdims=True)          # (Bt, 1, H)
    inv = pl.reciprocal(denom, approx=True)            # EUP slot
    inv = inv * (2.0 - denom * inv)                    # one Newton step -> ~f32 exact
    attn = e * inv                                     # (Bt, S, H) f32

    # --- attn store directly in the final (H, B, S) layout (XLU transpose in
    # kernel; store lane dim = seq_len instead of n_head).
    attn_ref[...] = jnp.transpose(attn, (2, 0, 1)).astype(attn_ref.dtype)

    # --- output: out[b, d] = sum_s attn[b, s, head(d)] * v[b, s, d]
    # Expand per-head attention across that head's dv lanes with the hoisted
    # 0/1 block-diagonal matrix (MXU), then one multiply + reduce over S.
    attn_lanes = jnp.dot(attn.reshape(bt * s, n_head).astype(mxu_dtype),
                         expand_ref[...].astype(mxu_dtype),
                         preferred_element_type=jnp.float32)            # (Bt*S, d_in)
    out = jnp.sum((attn_lanes * v2).reshape(bt, s, d_in), axis=1)       # (Bt, d_in)
    out_ref[...] = out.astype(out_ref.dtype)


def _pick_block_b(sz_b, seq_len, d_in, n_head):
    """Choose a batch-block size from a VMEM budget (multiple of 8, divides sz_b)."""
    # Per batch-row VMEM bytes of one pipeline buffer (v in + attn out + out),
    # f32 compute buffers assumed (conservative).
    per_row = 4 * (seq_len * d_in + seq_len * n_head + d_in)
    try:
        vmem_bytes = int(pltpu.get_tpu_info().vmem_capacity_bytes)
    except Exception:  # pragma: no cover - conservative fallback (v7x-sized)
        vmem_bytes = 64 << 20
    budget = min(vmem_bytes // 3, 24 << 20)            # leave room for double-buffering
    cap = max(8, budget // (2 * per_row))               # 2 pipeline buffers
    if sz_b >= 32:
        cap = min(cap, max(8, sz_b // 4))                # >= 4 grid steps: pipelining + dual-TC
    best = None
    b = 8
    limit = min(cap, sz_b)
    while b <= limit:
        if sz_b % b == 0:
            best = b
        b += 8
    return (best if best is not None else sz_b), vmem_bytes


def multi_head_attention(v, Q, Wk, bk, *, n_head, d_k, block_b=None,
                         mxu_dtype=jnp.float32, v_buffers=2):
    """JAX/Pallas equivalent of MultiHeadAttention.forward(v) (pad_mask=None).

    v  : (sz_b, seq_len, d_in)
    Q  : (n_head, d_k)               -- nn.Parameter Q
    Wk : (n_head * d_k, d_in)        -- fc1_k.weight
    bk : (n_head * d_k,)             -- fc1_k.bias
    mxu_dtype : dtype for MXU matmul operands (f32 accumulate).  bfloat16 avoids
                the f32 multi-pass MXU path but exceeds ~1e-4 accuracy.
    returns (output, attn):
      output: (n_head, sz_b, d_in // n_head)
      attn  : (n_head, sz_b, seq_len)
    """
    sz_b, seq_len, d_in = v.shape
    assert d_in % n_head == 0
    dv = d_in // n_head
    temperature = float(np.power(d_k, 0.5))

    # --- parameter-only precompute: fold fc1_k and 1/temperature into the query.
    wk3 = Wk.reshape(n_head, d_k, d_in)
    w_eff = jnp.einsum('hkd,hk->dh', wk3, Q) / temperature              # (d_in, H)
    b_eff = (jnp.einsum('hk,hk->h', bk.reshape(n_head, d_k), Q)
             / temperature).reshape(1, n_head)                          # (1, H)
    # Hoisted block-diagonal head->lanes expansion (built once, tiny).
    expand = jnp.asarray(
        (np.arange(n_head)[:, None] == (np.arange(d_in)[None, :] // dv)
         ).astype(np.float32))                                          # (H, d_in)

    # --- batch blocking from the VMEM budget (multi-step grid at scale).
    auto_block, vmem_bytes = _pick_block_b(sz_b, seq_len, d_in, n_head)
    if block_b is None:
        block_b = auto_block
    assert sz_b % block_b == 0 and (block_b == sz_b or block_b % 8 == 0)
    grid = (sz_b // block_b,)

    per_row = 4 * (seq_len * d_in + seq_len * n_head + d_in)
    needed = 2 * block_b * per_row + (1 << 20)          # double-buffered tiles + consts
    vmem_limit = max(32 << 20, int(2.5 * needed))
    vmem_limit = min(vmem_limit, max(32 << 20, vmem_bytes - (8 << 20)))

    v_spec_kwargs = {}
    if v_buffers is not None and v_buffers != 2:
        v_spec_kwargs = dict(pipeline_mode=pl.Buffered(int(v_buffers)))

    out_flat, attn_hbs = pl.pallas_call(
        functools.partial(_mha_kernel, mxu_dtype=mxu_dtype),
        grid=grid,
        in_specs=[
            pl.BlockSpec((block_b, seq_len, d_in), lambda i: (i, 0, 0),
                         **v_spec_kwargs),                              # v (single copy)
            pl.BlockSpec((d_in, n_head), lambda i: (0, 0)),             # w_eff (const)
            pl.BlockSpec((1, n_head), lambda i: (0, 0)),                # b_eff (const)
            pl.BlockSpec((n_head, d_in), lambda i: (0, 0)),             # expand (const)
        ],
        out_specs=[
            pl.BlockSpec((block_b, d_in), lambda i: (i, 0)),            # out, lane-dense
            pl.BlockSpec((n_head, block_b, seq_len), lambda i: (0, i, 0)),  # attn, final layout
        ],
        out_shape=[
            jax.ShapeDtypeStruct((sz_b, d_in), v.dtype),
            jax.ShapeDtypeStruct((n_head, sz_b, seq_len), v.dtype),
        ],
        compiler_params=pltpu.CompilerParams(
            dimension_semantics=("parallel",),
            vmem_limit_bytes=int(vmem_limit)),
    )(v, w_eff, b_eff, expand)

    # Only the small (B, d_in) output still needs layout glue (cheap).
    output = jnp.transpose(out_flat.reshape(sz_b, n_head, dv), (1, 0, 2))  # (H, B, dv)
    return output, attn_hbs


def _reference(v, Q, Wk, bk, *, n_head, d_k):
    """Pure-JAX reference mirroring the PyTorch forward (eval mode)."""
    sz_b, seq_len, d_in = v.shape
    dv = d_in // n_head
    k = v @ Wk.T + bk                                                        # (B, S, H*d_k)
    k = jnp.transpose(k.reshape(sz_b, seq_len, n_head, d_k), (2, 0, 1, 3))   # (H, B, S, d_k)
    scores = jnp.einsum('hd,hbsd->hbs', Q, k) / np.power(d_k, 0.5)
    attn = jax.nn.softmax(scores, axis=-1)
    vh = jnp.transpose(v.reshape(sz_b, seq_len, n_head, dv), (2, 0, 1, 3))
    out = jnp.einsum('hbs,hbsd->hbd', attn, vh)
    return out, attn


if __name__ == "__main__":
    n_head, d_k, d_in = 4, 8, 32
    seq_len = 8

    key = jax.random.PRNGKey(0)
    k1, k2, k3, k4 = jax.random.split(key, 4)

    # Deterministic parameter init matching the module's __init__ shapes:
    std = float(np.sqrt(2.0 / d_k))
    Q = jax.random.normal(k1, (n_head, d_k), jnp.float32) * std          # nn.Parameter Q
    Wk = jax.random.normal(k2, (n_head * d_k, d_in), jnp.float32) * std  # fc1_k.weight
    bound = 1.0 / float(np.sqrt(d_in))
    bk = jax.random.uniform(k3, (n_head * d_k,), jnp.float32,
                            minval=-bound, maxval=bound)                 # fc1_k.bias

    # Case 1: small shapes consistent with the module (single grid step).
    sz_b = 2
    v = jax.random.normal(k4, (sz_b, seq_len, d_in), jnp.float32)
    out, attn = multi_head_attention(v, Q, Wk, bk, n_head=n_head, d_k=d_k)
    out, attn = jax.block_until_ready((out, attn))
    out_ref, attn_ref = _reference(v, Q, Wk, bk, n_head=n_head, d_k=d_k)
    np.testing.assert_allclose(np.asarray(out), np.asarray(out_ref), rtol=1e-4, atol=1e-4)
    np.testing.assert_allclose(np.asarray(attn), np.asarray(attn_ref), rtol=1e-4, atol=1e-4)
    assert out.shape == (n_head, sz_b, d_in // n_head)
    assert attn.shape == (n_head, sz_b, seq_len)

    # Case 2: exercise a multi-step, pipelined grid (block_b = 8 -> 2 steps).
    sz_b2 = 16
    v2 = jax.random.normal(jax.random.PRNGKey(1), (sz_b2, seq_len, d_in), jnp.float32)
    out2, attn2 = multi_head_attention(v2, Q, Wk, bk, n_head=n_head, d_k=d_k, block_b=8)
    out2, attn2 = jax.block_until_ready((out2, attn2))
    out2_ref, attn2_ref = _reference(v2, Q, Wk, bk, n_head=n_head, d_k=d_k)
    np.testing.assert_allclose(np.asarray(out2), np.asarray(out2_ref), rtol=1e-4, atol=1e-4)
    np.testing.assert_allclose(np.asarray(attn2), np.asarray(attn2_ref), rtol=1e-4, atol=1e-4)
    assert out2.shape == (n_head, sz_b2, d_in // n_head)
    assert attn2.shape == (n_head, sz_b2, seq_len)

    print("KERNEL_OK")
</pallas_src>

<mosaic_0001>
module attributes {stable_mosaic.version = 11 : i64} {
  func.func @_mha_kernel(%arg0: i32, %arg1: memref<2x8x32xf32, #tpu.memory_space<vmem>>, %arg2: memref<32x4xf32, #tpu.memory_space<vmem>>, %arg3: memref<1x4xf32, #tpu.memory_space<vmem>>, %arg4: memref<4x32xf32, #tpu.memory_space<vmem>>, %arg5: memref<2x32xf32, #tpu.memory_space<vmem>>, %arg6: memref<4x2x8xf32, #tpu.memory_space<vmem>>) attributes {dimension_semantics = [#tpu.dimension_semantics<parallel>], iteration_bounds = array<i64: 1>, scalar_prefetch = 0 : i64, scratch_operands = 0 : i64, tpu.core_type = #tpu.core_type<tc>, window_params = [{transform_indices = @transform_0, window_bounds = array<i64: 2, 8, 32>}, {pipeline_mode = #tpu.pipeline_mode<synchronous>, transform_indices = @transform_1, window_bounds = array<i64: 32, 4>}, {pipeline_mode = #tpu.pipeline_mode<synchronous>, transform_indices = @transform_2, window_bounds = array<i64: 1, 4>}, {pipeline_mode = #tpu.pipeline_mode<synchronous>, transform_indices = @transform_3, window_bounds = array<i64: 4, 32>}, {transform_indices = @transform_4, window_bounds = array<i64: 2, 32>}, {transform_indices = @transform_5, window_bounds = array<i64: 4, 2, 8>}]} {
    %c0 = arith.constant 0 : index
    %c0_0 = arith.constant 0 : index
    %c0_1 = arith.constant 0 : index
    %0 = vector.load %arg1[%c0, %c0_0, %c0_1] : memref<2x8x32xf32, #tpu.memory_space<vmem>>, vector<2x8x32xf32>
    %1 = vector.shape_cast %0 : vector<2x8x32xf32> to vector<16x32xf32>
    %c0_2 = arith.constant 0 : index
    %c0_3 = arith.constant 0 : index
    %2 = vector.load %arg2[%c0_2, %c0_3] : memref<32x4xf32, #tpu.memory_space<vmem>>, vector<32x4xf32>
    %cst = arith.constant dense<0.000000e+00> : vector<16x4xf32>
    %3 = tpu.matmul %1, %2, %cst {dimension_numbers = #tpu.dot_dimension_numbers<[1], [0], [0], [1], [0, 0, 1, 1], [], []>} : vector<16x32xf32>, vector<32x4xf32>, vector<16x4xf32> -> vector<16x4xf32>
    %c0_4 = arith.constant 0 : index
    %c0_5 = arith.constant 0 : index
    %4 = vector.load %arg3[%c0_4, %c0_5] : memref<1x4xf32, #tpu.memory_space<vmem>>, vector<1x4xf32>
    %5 = vector.broadcast %4 : vector<1x4xf32> to vector<16x4xf32>
    %6 = arith.addf %3, %5 : vector<16x4xf32>
    %7 = vector.shape_cast %6 : vector<16x4xf32> to vector<2x8x4xf32>
    %cst_6 = arith.constant dense<0xFF800000> : vector<2x4xf32>
    %8 = vector.multi_reduction <maximumf>, %7, %cst_6 [1] : vector<2x8x4xf32> to vector<2x4xf32>
    %9 = vector.shape_cast %8 : vector<2x4xf32> to vector<2x1x4xf32>
    %10 = vector.broadcast %9 : vector<2x1x4xf32> to vector<2x8x4xf32>
    %11 = arith.subf %7, %10 : vector<2x8x4xf32>
    %12 = math.exp %11 : vector<2x8x4xf32>
    %cst_7 = arith.constant dense<0.000000e+00> : vector<2x4xf32>
    %13 = vector.multi_reduction <add>, %12, %cst_7 [1] : vector<2x8x4xf32> to vector<2x4xf32>
    %14 = vector.shape_cast %13 : vector<2x4xf32> to vector<2x1x4xf32>
    %15 = tpu.reciprocal %14 {approx = true} : vector<2x1x4xf32> -> vector<2x1x4xf32>
    %16 = arith.mulf %14, %15 : vector<2x1x4xf32>
    %cst_8 = arith.constant 2.000000e+00 : f32
    %17 = vector.broadcast %cst_8 : f32 to vector<2x1x4xf32>
    %18 = arith.subf %17, %16 : vector<2x1x4xf32>
    %19 = arith.mulf %15, %18 : vector<2x1x4xf32>
    %20 = vector.broadcast %19 : vector<2x1x4xf32> to vector<2x8x4xf32>
    %21 = arith.mulf %12, %20 : vector<2x8x4xf32>
    %22 = tpu.transpose %21, [2, 0, 1] : vector<2x8x4xf32> -> vector<4x2x8xf32>
    %c0_9 = arith.constant 0 : index
    %c0_10 = arith.constant 0 : index
    %c0_11 = arith.constant 0 : index
    %23 = vector.load %arg6[%c0_9, %c0_10, %c0_11] : memref<4x2x8xf32, #tpu.memory_space<vmem>>, vector<4x2x8xf32>
    tpu.vector_store %arg6[%c0_9, %c0_10, %c0_11], %22 {strides = array<i32>} : memref<4x2x8xf32, #tpu.memory_space<vmem>>, vector<4x2x8xf32>,
    %24 = vector.shape_cast %21 : vector<2x8x4xf32> to vector<16x4xf32>
    %c0_12 = arith.constant 0 : index
    %c0_13 = arith.constant 0 : index
    %25 = vector.load %arg4[%c0_12, %c0_13] : memref<4x32xf32, #tpu.memory_space<vmem>>, vector<4x32xf32>
    %cst_14 = arith.constant dense<0.000000e+00> : vector<16x32xf32>
    %26 = tpu.matmul %24, %25, %cst_14 {dimension_numbers = #tpu.dot_dimension_numbers<[1], [0], [0], [1], [0, 0, 1, 1], [], []>} : vector<16x4xf32>, vector<4x32xf32>, vector<16x32xf32> -> vector<16x32xf32>
    %27 = arith.mulf %26, %1 : vector<16x32xf32>
    %28 = vector.shape_cast %27 : vector<16x32xf32> to vector<2x8x32xf32>
    %cst_15 = arith.constant dense<0.000000e+00> : vector<2x32xf32>
    %29 = vector.multi_reduction <add>, %28, %cst_15 [1] : vector<2x8x32xf32> to vector<2x32xf32>
    %c0_16 = arith.constant 0 : index
    %c0_17 = arith.constant 0 : index
    %30 = vector.load %arg5[%c0_16, %c0_17] : memref<2x32xf32, #tpu.memory_space<vmem>>, vector<2x32xf32>
    tpu.vector_store %arg5[%c0_16, %c0_17], %29 {strides = array<i32>} : memref<2x32xf32, #tpu.memory_space<vmem>>, vector<2x32xf32>,
    return
  }
  func.func @transform_0(%arg0: i32) -> (i32, i32, i32) {
    %c0_i32 = arith.constant 0 : i32
    %c0_i32_0 = arith.constant 0 : i32
    %c0_i32_1 = arith.constant 0 : i32
    return %arg0, %c0_i32, %c0_i32_0 : i32, i32, i32
  }
  func.func @transform_1(%arg0: i32) -> (i32, i32) {
    %c0_i32 = arith.constant 0 : i32
    %c0_i32_0 = arith.constant 0 : i32
    %c0_i32_1 = arith.constant 0 : i32
    return %c0_i32, %c0_i32_0 : i32, i32
  }
  func.func @transform_2(%arg0: i32) -> (i32, i32) {
    %c0_i32 = arith.constant 0 : i32
    %c0_i32_0 = arith.constant 0 : i32
    %c0_i32_1 = arith.constant 0 : i32
    return %c0_i32, %c0_i32_0 : i32, i32
  }
  func.func @transform_3(%arg0: i32) -> (i32, i32) {
    %c0_i32 = arith.constant 0 : i32
    %c0_i32_0 = arith.constant 0 : i32
    %c0_i32_1 = arith.constant 0 : i32
    return %c0_i32, %c0_i32_0 : i32, i32
  }
  func.func @transform_4(%arg0: i32) -> (i32, i32) {
    %c0_i32 = arith.constant 0 : i32
    %c0_i32_0 = arith.constant 0 : i32
    return %arg0, %c0_i32 : i32, i32
  }
  func.func @transform_5(%arg0: i32) -> (i32, i32, i32) {
    %c0_i32 = arith.constant 0 : i32
    %c0_i32_0 = arith.constant 0 : i32
    %c0_i32_1 = arith.constant 0 : i32
    return %c0_i32, %arg0, %c0_i32_0 : i32, i32, i32
  }
}

</mosaic_0001>

<bundles_post_ra>
// kernel: tpu_custom_call.1
= control target key start
LH: loop header
LB: loop body
LE: loop exit
PB: predicated region body
PF: predicated region fallthrough
CT: control target
= control target key end

     0   :  { %11 = vsyncpa [#allocation3], 0  ;;  %vm34_vm0 = vcmask 261120   ;;  %s606_s0 = inlined_call_operand.vmem [shape: f32[2,8,32], index: 0, kind: input, shape index: {}]   ;;  %s607_s1 = inlined_call_operand.vmem [shape: f32[32,4], index: 1, kind: input, shape index: {}]   ;;  %s608_s2 = inlined_call_operand.vmem [shape: f32[1,4], index: 2, kind: input, shape index: {}]   ;;  %s609_s3 = inlined_call_operand.vmem [shape: f32[4,32], index: 3, kind: input, shape index: {}]   ;;  %s610_s4 = inlined_call_operand.hbm [shape: f32[2,32], index: 4, kind: output, shape index: {0}]   ;;  %s611_s5 = inlined_call_operand.hbm [shape: f32[4,2,8], index: 5, kind: output, shape index: {1}]  }
   0x1   :  { %v23_v0 = vld [vmem:[%s607_s1] sm:$0xff]  ;;  %v24_v1 = vld [vmem:[%s607_s1 + $0x8] sm:$0xff]  ;;  %v25_v2 = vld [vmem:[%s607_s1 + $0x10] sm:$0xff] }
   0x2   :  { %v432_v3 = vpack.c.bf16 %v24_v1, %v23_v0  ;;  %v26_v4 = vld [vmem:[%s607_s1 + $0x18] sm:$0xff]  ;;  %v555_v5 = vld [vmem:[%s606_s0] sm:$0xff] }
   0x3   :  { %v436_v6 = vpack.c.bf16 %v26_v4, %v25_v2  ;;  %424 = vmatprep.mubr.msk.f32.mxu0 %vm34_vm0, %v555_v5 }
   0x4   :  { %12 = vsyncpa [#allocation5], 0  ;;  %433 = vmatprep.subr.bf16.mxu0 %v432_v3  ;;  %v562_v7 = vld [vmem:[%s606_s0 + $0x8] sm:$0xff]  ;;  %v262_v8 = vld [vmem:[%s609_s3] sm:$0xf]  ;;  %vm269_vm1 = vcmask 1043456   ;;  %v228_v60 = vlaneseq }
   0x5   :  { %435 = vmatpush3.bf16.msra.mxu0 %v432_v3  ;;  %427 = vmatprep.subr.msk.mxu1 %vm269_vm1, %v262_v8  ;;  %v401_v9 = vld [vmem:[%s608_s2] ss:$0 sm:$0xff]  ;;  %vm116_vm2 = vcmask 31744   ;;  %v503_v58 = vmov 1983009808   ;;  %s505_s0 = smov [#allocation4]  }
   0x6   :  { %437 = vmatprep.subr.bf16.mxu0 %v436_v6  ;;  %428 = vmatpush3.msk.msra.mxu1 %vm269_vm1, %v262_v8  ;;  %v226_v59 = vunpack.c.l.s4 %v503_v58  ;;  %v229_v62 = vshrl.u32 %v228_v60, 7  ;;  %v504_v63 = vmov 1934713408   ;;  %s386_s2 = sshll.u32 %s505_s0, 4  ;;  %vm257_vm3 = vcmask 58368   ;;  %s387_s2 = int_to_ptr.vmem [resolvable:$true] %s386_s2 }
   0x7   :  { %v242_v0 = vunpack.c.l.s4 %v504_v63  ;;  %s455_s3 = scalar_lea.vmem %s387_s2, 128  ;;  %p460_p1 = scmp.lt.s32.totalorder %s387_s2, %s387_s2 }
   0x8   :  { %v227_v61 = vunpack.c.0.s8 %v226_v59  ;;  %p456_p0 = scmp.ne.s32.totalorder %s387_s2, %s455_s3  ;;  %p461_p2 = scmp.lt.s32.totalorder %s455_s3, %s455_s3 }
   0x9   :  { %439 = vmatpush3.bf16.msra.mxu0 %v436_v6  ;;  %v243_v3 = vunpack.c.0.s8 %v242_v0 }
   0xa   :  { %v230_v1 = vsub.s32 %v227_v61, %v229_v62  ;;  %p462_p3 = por %p461_p2, %p460_p1 }
   0xb   :  { %v246_v8 = vsub.s32 %v243_v3, %v229_v62 }
   0xc   :  { %425 = vmatmul.mubr.msk.f32.vlgmr.msra.gmra.mrb[0].mxu0 %vm34_vm0, %v562_v7  ;;  %p463_p4 = pnand %p462_p3, %p456_p0 }
  0xdf   :  { %v426_v10 = vpop.f32.mrb[0].mxu0 }
  0xe0   :  { %v113_v11 = vadd.f32 %v426_v10, %v401_v9  ;;  %v107_v12 = vpop.f32.mrb[1].mxu0 }
  0xe1   :  { %v108_v13 = vadd.f32 %v401_v9, %v107_v12 }
  0xe2   :  { %v124_v14 = vsel %vm116_vm2, %v113_v11, -inf }
  0xe3   :  { %v125_v15 = vrot.slane %v124_v14, 4  ;;  %v117_v16 = vsel %vm116_vm2, %v108_v13, -inf }
  0xe4   :  { %v118_v17 = vrot.slane %v117_v16, 4 }
  0xe5   :  { %v126_v18 = vmax.f32 %v124_v14, %v125_v15  ;;  %v506_v14 = vmov 0.0  }
  0xe6   :  { %v119_v19 = vmax.f32 %v117_v16, %v118_v17 }
  0xe7   :  { %v127_v20 = vrot.slane %v126_v18, 2 }
  0xe8   :  { %v120_v21 = vrot.slane %v119_v19, 2 }
  0xe9   :  { %v128_v22 = vmax.f32 %v126_v18, %v127_v20 }
  0xea   :  { %v121_v23 = vmax.f32 %v119_v19, %v120_v21 }
  0xeb   :  { %v129_v24 = vrot.slane %v128_v22, 1 }
  0xec   :  { %v122_v25 = vrot.slane %v121_v23, 1 }
  0xed   :  { %v130_v26 = vmax.f32 %v128_v22, %v129_v24 }
  0xee   :  { %v123_v27 = vmax.f32 %v121_v23, %v122_v25 }
  0xef   :  { %v132_v28 = vsub.f32 %v113_v11, %v130_v26 }
  0xf0   :  { %v131_v29 = vsub.f32 %v108_v13, %v123_v27 }
  0xf1   :  { %v135_v30 = vmul.f32 1.442695, %v132_v28 }
  0xf2   :  { %v133_v31 = vmul.f32 1.442695, %v131_v29 }
  0xf3   :  { %447 = vpow2.f32 %v135_v30 }
  0xf4   :  { %449 = vpow2.f32 %v133_v31 }
  0xfd   :  { %v448_v32 = vpop.eup %447 }
  0xfe   :  { %v450_v33 = vpop.eup %449  ;;  %v144_v34 = vsel %vm116_vm2, %v448_v32, 0.0 }
  0xff   :  { %v145_v35 = vrot.slane %v144_v34, 4  ;;  %v137_v36 = vsel %vm116_vm2, %v450_v33, 0.0 }
 0x100   :  { %v138_v37 = vrot.slane %v137_v36, 4 }
 0x101   :  { %v146_v38 = vadd.f32 %v145_v35, %v144_v34 }
 0x102   :  { %v139_v39 = vadd.f32 %v138_v37, %v137_v36 }
 0x103   :  { %v147_v40 = vrot.slane %v146_v38, 2 }
 0x104   :  { %v140_v41 = vrot.slane %v139_v39, 2 }
 0x105   :  { %v148_v42 = vadd.f32 %v147_v40, %v146_v38 }
 0x106   :  { %v141_v43 = vadd.f32 %v140_v41, %v139_v39 }
 0x107   :  { %v149_v44 = vrot.slane %v148_v42, 1 }
 0x108   :  { %v142_v45 = vrot.slane %v141_v43, 1 }
 0x109   :  { %v150_v46 = vadd.f32 %v149_v44, %v148_v42 }
 0x10a   :  { %v143_v47 = vadd.f32 %v142_v45, %v141_v43 }
 0x10b   :  { %451 = vrcp.f32 %v150_v46 }
 0x10c   :  { %453 = vrcp.f32 %v143_v47 }
 0x115   :  { %v452_v48 = vpop.eup %451 }
 0x116   :  { %v454_v49 = vpop.eup %453  ;;  %v154_v50 = vmul.f32 %v452_v48, %v150_v46 }
 0x117   :  { %v153_v51 = vmul.f32 %v454_v49, %v143_v47 }
 0x118   :  { %v156_v52 = vsub.f32 2.0, %v154_v50 }
 0x119   :  { %v155_v53 = vsub.f32 2.0, %v153_v51 }
 0x11a   :  { %v158_v54 = vmul.f32 %v452_v48, %v156_v52 }
 0x11b   :  { %v157_v55 = vmul.f32 %v454_v49, %v155_v53 }
 0x11c   :  { %v160_v57 = vmul.f32 %v448_v32, %v158_v54 }
 0x11d   :  { %v159_v56 = vmul.f32 %v450_v33, %v157_v55 }
 0x11f   :  { %161 = vxpose.xlu0.b32.start.end [1/1] (short) (narrow) %v159_v56, 8  ;;  %429 = vmatprep.mubr.msk.f32.mxu1 %vm116_vm2, %v159_v56 }
 0x120   :  { %430 = vmatmul.mubr.msk.f32.vlgmr.msra.gmra.mrb[0].mxu1 %vm116_vm2, %v160_v57 }
 0x123   :  { %193 = vxpose.xlu0.b32.start.end [1/1] (short) (narrow) %v160_v57, 8 }
 0x19f   :  { %v177_v2 = vpop.trf.xlu0 }
 0x1a0   :  { %v231_v4 = vrot.slane %v177_v2, %v230_v1 }
 0x1a3   :  { %v209_v6 = vpop.trf.xlu0 }
 0x1a4   :  { %v238_v9 = vrot.slane %v209_v6, %v230_v1 }
 0x1a6   :  { %v239_v10 = vcombine.low %v231_v4, %v238_v9  ;;  %v240_v11 = vcombine.high %v231_v4, %v238_v9 }
 0x1a8   :  { %v247_v12 = vrot.slane %v239_v10, %v246_v8  ;;  %v254_v13 = vrot.slane %v240_v11, %v246_v8 }
 0x1aa   :  { %v255_v15 = vcombine.high %v247_v12, %v506_v14  ;;  %v256_v16 = vcombine.high %v254_v13, %v506_v14  ;;  %258 = vst.msk [vmem:[#allocation4] sm:$0x3] %vm257_vm3, %v247_v12  ;;  %260 = vst.msk [vmem:[#allocation4 + $0x4] sm:$0x3] %vm257_vm3, %v254_v13 }
 0x1ac   :  { %259 = vst.msk [vmem:[#allocation4 + $0x2] sm:$0x3] %vm257_vm3, %v255_v15  ;;  %261 = vst.msk [vmem:[#allocation4 + $0x6] sm:$0x3] %vm257_vm3, %v256_v16 }
 0x1ad   :  { %466 = shalt.err (!%p463_p4)
}
 0x1ae   :  { %s467_s10 = scalar_lea.hbm %s611_s5, 128 }
 0x1af   :  { %p468_p5 = scmp.ne.s32.totalorder %s611_s5, %s467_s10  ;;  %p471_p6 = scmp.lt.u32.totalorder %s467_s10, %s611_s5 }
 0x1b1   :  { %p473_p7 = pnand %p471_p6, %p468_p5 }
 0x1b3   :  { %476 = shalt.err (!%p473_p7)
}
 0x1b4   :  { %s507_s15 = smov 32   ;;  %s508_s16 = smov 2   ;;  %vm366_vm4 = vcmask 1041409   ;;  %vm369_vm5 = vcmask 254976  }
 0x1b5   :  { %392 = dma.vmem_to_hbm [thread:$0]  %s387_s2, 128, %s611_s5, [#allocation5], %s507_s15, %s507_s15, %s508_s16  }
 0x1b6   :  { %s509_s5 = smov [#allocation2]  }
 0x1b7   :  { %s377_s19 = sshll.u32 %s509_s5, 4  ;;  %s378_s19 = int_to_ptr.vmem [resolvable:$true] %s377_s19 }
 0x1b8   :  { %s477_s20 = scalar_lea.vmem %s378_s19, 32  ;;  %p482_p9 = scmp.lt.s32.totalorder %s378_s19, %s378_s19 }
 0x1b9   :  { %p478_p8 = scmp.ne.s32.totalorder %s378_s19, %s477_s20  ;;  %p483_p10 = scmp.lt.s32.totalorder %s477_s20, %s477_s20 }
 0x1bb   :  { %p484_p11 = por %p483_p10, %p482_p9 }
 0x1bd   :  { %p485_p12 = pnand %p484_p11, %p478_p8 }
 0x1f3   :  { %v431_v17 = vpop.f32.mrb[0].mxu1 }
 0x1f4   :  { %v349_v18 = vmul.f32 %v431_v17, %v562_v7  ;;  %v339_v19 = vpop.f32.mrb[1].mxu1 }
 0x1f5   :  { %v348_v20 = vmul.f32 %v339_v19, %v555_v5 }
 0x1f6   :  { %v357_v21 = vsel %vm34_vm0, %v349_v18, 0.0 }
 0x1f7   :  { %v358_v22 = vrot.slane %v357_v21, 4  ;;  %v350_v23 = vsel %vm34_vm0, %v348_v20, 0.0 }
 0x1f8   :  { %v351_v24 = vrot.slane %v350_v23, 4 }
 0x1f9   :  { %v359_v25 = vadd.f32 %v358_v22, %v357_v21 }
 0x1fa   :  { %v352_v26 = vadd.f32 %v351_v24, %v350_v23 }
 0x1fb   :  { %v360_v27 = vrot.slane %v359_v25, 2 }
 0x1fc   :  { %v353_v28 = vrot.slane %v352_v26, 2 }
 0x1fd   :  { %v361_v29 = vadd.f32 %v360_v27, %v359_v25 }
 0x1fe   :  { %v354_v30 = vadd.f32 %v353_v28, %v352_v26 }
 0x1ff   :  { %v362_v31 = vrot.slane %v361_v29, 1 }
 0x200   :  { %v355_v32 = vrot.slane %v354_v30, 1 }
 0x201   :  { %v363_v7 = vadd.f32 %v362_v31, %v361_v29 }
 0x202   :  { %v356_v33 = vadd.f32 %v355_v32, %v354_v30 }
 0x204   :  { %v367_v5 = vsel %vm366_vm4, %v363_v7, %v356_v33 }
 0x205   :  { %370 = vst.msk [vmem:[#allocation2] sm:$0x3] %vm369_vm5, %v367_v5 }
 0x206   :  { %488 = shalt.err (!%p485_p12)
}
 0x207   :  { %s489_s23 = scalar_lea.hbm %s610_s4, 32 }
 0x208   :  { %p490_p13 = scmp.ne.s32.totalorder %s610_s4, %s489_s23  ;;  %p493_p0 = scmp.lt.u32.totalorder %s489_s23, %s610_s4 }
 0x20a   :  { %p495_p1 = pnand %p493_p0, %p490_p13 }
 0x20c   :  { %498 = shalt.err (!%p495_p1)
}
 0x20d   :  { %380 = dma.vmem_to_hbm [thread:$0]  %s378_s19, 32, %s610_s4, [#allocation3]  }
 0x20e   :  { %499 = dma.done.wait [#allocation3], 32  }
 0x20f   :  { %500 = vsyncadd [#allocation3], 4294967264 }
 0x210   :  { %501 = dma.done.wait [#allocation5], 128  }
 0x211   :  { %502 = vsyncadd [#allocation5], 4294967168 }
 0x212   :  { %399 = vsyncpa [#allocation3], 1 }
 0x213   :  { %400 = vsyncpa [#allocation5], 1 }

</bundles_post_ra>
